<compile_context>
chip_gen: v7x
topology: tpu7x:2x2x1
jax: 0.10.0
libtpu: 0.0.40
codegen_flags: <defaults>
</compile_context>

<pallas_src>
import functools

import jax
import jax.numpy as jnp
from jax.experimental import pallas as pl
from jax.experimental.pallas import tpu as pltpu


def _madogram_kernel(logf_ref, invw_ref, v_ref, acc_ref, *,
                     dim, tb, chunk, num_chunks, inv_dim, use_bf16_exp):
    """Accumulate sum_s( max_d F^(1/w) - mean_d F^(1/w) ) lane-wise into acc_ref.

    grid = (sample_splits, batch_tiles, sample_tiles_per_split); the last axis is
    the accumulation ("arbitrary") axis, the two leading axes are "parallel".
    """
    s_idx = pl.program_id(2)

    @pl.when(s_idx == 0)
    def _init():
        acc_ref[...] = jnp.zeros_like(acc_ref)

    inv_w = invw_ref[...]                                   # (tb, dim), resident
    # Hoisted lane-broadcasts of the 1/w columns: one broadcast_in_dim per d per
    # grid step instead of one per d per chunk (JAX does not CSE broadcasts).
    inv_w_b = [jnp.broadcast_to(inv_w[:, d:d + 1], (tb, chunk)) for d in range(dim)]

    # Statically unrolled chunk loop: keeps the elementwise chain in vregs and
    # bounds the accumulator to (tb, chunk) regardless of the tile width tn.
    for ci in range(num_chunks):
        lf = logf_ref[:, pl.ds(ci * chunk, chunk)]          # (dim, chunk) streamed
        fw_max = None
        fw_sum = None
        for d in range(dim):
            p = lf[d:d + 1, :] * inv_w_b[d]                 # (tb, chunk)
            if use_bf16_exp:
                # opt-in fast path for v6e/v7x only (bf16 EUP); ~4e-3 rel. error
                e = jnp.exp(p.astype(jnp.bfloat16)).astype(jnp.float32)
            else:
                e = jnp.exp(p)                              # EUP: the binding unit
            fw_max = e if fw_max is None else jnp.maximum(fw_max, e)
            fw_sum = e if fw_sum is None else fw_sum + e
        acc_ref[...] += fw_max - fw_sum * inv_dim

    @pl.when(s_idx == pl.num_programs(2) - 1)
    def _finalize():
        # single deferred cross-lane reduce; 1/n, c and (v+c)/(1-v-c) run in the
        # wrapper on (batch,)-sized vectors (also combines per-split partials).
        v_ref[...] = jnp.sum(acc_ref[...], axis=1, keepdims=True)[None]


def madogram_forward(F, w, *, tn_max=32768, sample_splits=2, tb=None,
                     use_bf16_exp=False):
    """F: (dim, n) empirical CDF strictly in (0,1); w: (batch, dim) positive -> A: (batch,)."""
    dim, n = F.shape
    batch, dim_w = w.shape
    assert dim_w == dim

    f32 = jnp.float32
    w32 = w.astype(f32)
    log_f = jnp.log(F.astype(f32))          # grid-invariant: hoisted out of the kernel
    inv_w = 1.0 / w32                       # hoisted out of the kernel

    # ---- batch (sublane) tiling -------------------------------------------
    if tb is None:
        tb = 8 if batch <= 8 else (16 if batch <= 16 else 32)
    b_pad = pl.cdiv(batch, tb) * tb
    if b_pad != batch:
        # pad with w = 1 -> F^(1/w) = F (finite); rows are sliced off in the epilogue
        inv_w = jnp.pad(inv_w, ((0, b_pad - batch), (0, 0)), constant_values=1.0)

    # ---- sample (lane) tiling ----------------------------------------------
    # chunk sized so each live (tb, chunk) f32 slab is ~4 vregs (tb*chunk = 4096)
    n_128 = pl.cdiv(n, 128) * 128
    chunk = min(max(128, 4096 // tb), n_128)
    chunks_total = pl.cdiv(n, chunk)
    chunks_per_tile = max(1, min(tn_max // chunk, chunks_total))
    tn = chunks_per_tile * chunk

    # ---- optional split of the sample axis across TensorCores (v7x megacore) ----
    s_tiles = pl.cdiv(n, tn)
    splits = max(1, min(sample_splits, s_tiles))
    s_tiles_pad = pl.cdiv(s_tiles, splits) * splits
    s_per_split = s_tiles_pad // splits
    n_pad = s_tiles_pad * tn
    if n_pad != n:
        # pad with log F = 0 -> F^(1/w) = 1 for every d -> contributes exactly 0
        log_f = jnp.pad(log_f, ((0, 0), (0, n_pad - n)))

    kernel = functools.partial(
        _madogram_kernel, dim=dim, tb=tb, chunk=chunk,
        num_chunks=chunks_per_tile, inv_dim=1.0 / dim, use_bf16_exp=use_bf16_exp)

    partial_v = pl.pallas_call(
        kernel,
        out_shape=jax.ShapeDtypeStruct((splits, b_pad, 1), f32),
        grid_spec=pltpu.PrefetchScalarGridSpec(
            num_scalar_prefetch=0,
            grid=(splits, b_pad // tb, s_per_split),
            in_specs=[
                # streamed log F tile (double-buffered by the pipeline)
                pl.BlockSpec((dim, tn), lambda c, b, s: (0, c * s_per_split + s)),
                # 1/w tile, resident across the whole sample sweep
                pl.BlockSpec((tb, dim), lambda c, b, s: (b, 0)),
            ],
            out_specs=pl.BlockSpec((1, tb, 1), lambda c, b, s: (c, b, 0)),
            scratch_shapes=[pltpu.VMEM((tb, chunk), f32)],
        ),
        compiler_params=pltpu.CompilerParams(
            dimension_semantics=("parallel", "parallel", "arbitrary"),
            # working set is ~1-2 MiB (double-buffered log_f tile + fixed acc),
            # but be explicit so larger tn/tb sweeps stay safe on v5e (16 MiB
            # default scoped) and under v7x's 64 MiB physical VMEM.
            vmem_limit_bytes=32 * 1024 * 1024),
    )(log_f, inv_w)

    # epilogue on (batch,)-sized vectors: combines per-split partial sums, applies
    # 1/n, c and A = (v+c)/(1-v-c); padded batch rows never reach this point.
    v = jnp.sum(partial_v[:, :batch, 0], axis=0) / n
    c = jnp.mean(w32 / (1.0 + w32), axis=1)
    s = v + c
    return s / (1.0 - s)


def make_F(samples):
    """MetaCE.__init__ with est_F='n+1': samples (n, dim) -> F (dim, n) = (rank+1)/(n+1)."""
    n, dim = samples.shape
    s = samples.T                                      # (dim, n)
    order = jnp.argsort(s, axis=1)
    ranks = jnp.argsort(order, axis=1).astype(jnp.float32)
    return (ranks + 1.0) / (n + 1.0)


if __name__ == "__main__":
    key = jax.random.PRNGKey(0)
    k1, k2 = jax.random.split(key)

    n_samples, dim, batch = 16, 4, 2
    samples = jax.random.normal(k1, (n_samples, dim), dtype=jnp.float32)
    # forward expects positive weights (copula weight vector), shape (batch, dim)
    w = jax.random.uniform(k2, (batch, dim), dtype=jnp.float32, minval=0.1, maxval=1.0)

    F = make_F(samples)                                # deterministic "parameter"

    A = madogram_forward(F, w)
    A = jax.block_until_ready(A)

    # pure-JAX reference (mirrors the PyTorch forward)
    Fw_ref = F[None] ** (1.0 / w[:, :, None])
    v_ref = jnp.mean(jnp.max(Fw_ref, axis=1) - jnp.mean(Fw_ref, axis=1), axis=1)
    c_ref = jnp.mean(w / (1.0 + w), axis=1)
    A_ref = (v_ref + c_ref) / (1.0 - v_ref - c_ref)

    assert A.shape == (batch,)
    assert jnp.allclose(A, A_ref, rtol=1e-5, atol=1e-5), (A, A_ref)
    print("KERNEL_OK")
</pallas_src>

<mosaic_0001>
module attributes {stable_mosaic.version = 11 : i64} {
  func.func @_madogram_kernel(%arg0: i32, %arg1: i32, %arg2: i32, %arg3: memref<4x128xf32, #tpu.memory_space<vmem>>, %arg4: memref<8x4xf32, #tpu.memory_space<vmem>>, %arg5: memref<1x8x1xf32, #tpu.memory_space<vmem>>, %arg6: memref<8x128xf32, #tpu.memory_space<vmem>>) attributes {dimension_semantics = [#tpu.dimension_semantics<parallel>, #tpu.dimension_semantics<parallel>, #tpu.dimension_semantics<arbitrary>], iteration_bounds = array<i64: 1, 1, 1>, scalar_prefetch = 0 : i64, scratch_operands = 1 : i64, tpu.core_type = #tpu.core_type<tc>, window_params = [{transform_indices = @transform_0, window_bounds = array<i64: 4, 128>}, {transform_indices = @transform_1, window_bounds = array<i64: 8, 4>}, {transform_indices = @transform_2, window_bounds = array<i64: 1, 8, 1>}]} {
    %c0_i32 = arith.constant 0 : i32
    %0 = arith.cmpi eq, %arg2, %c0_i32 : i32
    %1 = arith.extui %0 : i1 to i32
    %c0_i32_0 = arith.constant 0 : i32
    %2 = arith.cmpi ne, %1, %c0_i32_0 : i32
    scf.if %2 {
      %cst_10 = arith.constant 0.000000e+00 : f32
      %48 = vector.broadcast %cst_10 : f32 to vector<8x128xf32>
      %c0_11 = arith.constant 0 : index
      %c0_12 = arith.constant 0 : index
      %49 = vector.load %arg6[%c0_11, %c0_12] : memref<8x128xf32, #tpu.memory_space<vmem>>, vector<8x128xf32>
      tpu.vector_store %arg6[%c0_11, %c0_12], %48 {strides = array<i32>} : memref<8x128xf32, #tpu.memory_space<vmem>>, vector<8x128xf32>,
    } else {
    }
    %c0 = arith.constant 0 : index
    %c0_1 = arith.constant 0 : index
    %3 = vector.load %arg4[%c0, %c0_1] : memref<8x4xf32, #tpu.memory_space<vmem>>, vector<8x4xf32>
    %4 = vector.extract_strided_slice %3 {offsets = [0, 0], sizes = [8, 1], strides = [1, 1]} : vector<8x4xf32> to vector<8x1xf32>
    %5 = vector.shape_cast %4 : vector<8x1xf32> to vector<8x1xf32>
    %6 = vector.broadcast %5 : vector<8x1xf32> to vector<8x128xf32>
    %7 = vector.extract_strided_slice %3 {offsets = [0, 1], sizes = [8, 1], strides = [1, 1]} : vector<8x4xf32> to vector<8x1xf32>
    %8 = vector.shape_cast %7 : vector<8x1xf32> to vector<8x1xf32>
    %9 = vector.broadcast %8 : vector<8x1xf32> to vector<8x128xf32>
    %10 = vector.extract_strided_slice %3 {offsets = [0, 2], sizes = [8, 1], strides = [1, 1]} : vector<8x4xf32> to vector<8x1xf32>
    %11 = vector.shape_cast %10 : vector<8x1xf32> to vector<8x1xf32>
    %12 = vector.broadcast %11 : vector<8x1xf32> to vector<8x128xf32>
    %13 = vector.extract_strided_slice %3 {offsets = [0, 3], sizes = [8, 1], strides = [1, 1]} : vector<8x4xf32> to vector<8x1xf32>
    %14 = vector.shape_cast %13 : vector<8x1xf32> to vector<8x1xf32>
    %15 = vector.broadcast %14 : vector<8x1xf32> to vector<8x128xf32>
    %c0_2 = arith.constant 0 : index
    %c0_3 = arith.constant 0 : index
    %16 = vector.load %arg3[%c0_2, %c0_3] : memref<4x128xf32, #tpu.memory_space<vmem>>, vector<4x128xf32>
    %17 = vector.extract_strided_slice %16 {offsets = [0, 0], sizes = [1, 128], strides = [1, 1]} : vector<4x128xf32> to vector<1x128xf32>
    %18 = vector.broadcast %17 : vector<1x128xf32> to vector<8x128xf32>
    %19 = arith.mulf %18, %6 : vector<8x128xf32>
    %20 = math.exp %19 : vector<8x128xf32>
    %21 = vector.extract_strided_slice %16 {offsets = [1, 0], sizes = [1, 128], strides = [1, 1]} : vector<4x128xf32> to vector<1x128xf32>
    %22 = vector.broadcast %21 : vector<1x128xf32> to vector<8x128xf32>
    %23 = arith.mulf %22, %9 : vector<8x128xf32>
    %24 = math.exp %23 : vector<8x128xf32>
    %25 = arith.maximumf %20, %24 : vector<8x128xf32>
    %26 = arith.addf %20, %24 : vector<8x128xf32>
    %27 = vector.extract_strided_slice %16 {offsets = [2, 0], sizes = [1, 128], strides = [1, 1]} : vector<4x128xf32> to vector<1x128xf32>
    %28 = vector.broadcast %27 : vector<1x128xf32> to vector<8x128xf32>
    %29 = arith.mulf %28, %12 : vector<8x128xf32>
    %30 = math.exp %29 : vector<8x128xf32>
    %31 = arith.maximumf %25, %30 : vector<8x128xf32>
    %32 = arith.addf %26, %30 : vector<8x128xf32>
    %33 = vector.extract_strided_slice %16 {offsets = [3, 0], sizes = [1, 128], strides = [1, 1]} : vector<4x128xf32> to vector<1x128xf32>
    %34 = vector.broadcast %33 : vector<1x128xf32> to vector<8x128xf32>
    %35 = arith.mulf %34, %15 : vector<8x128xf32>
    %36 = math.exp %35 : vector<8x128xf32>
    %37 = arith.maximumf %31, %36 : vector<8x128xf32>
    %38 = arith.addf %32, %36 : vector<8x128xf32>
    %c0_4 = arith.constant 0 : index
    %c0_5 = arith.constant 0 : index
    %39 = vector.load %arg6[%c0_4, %c0_5] : memref<8x128xf32, #tpu.memory_space<vmem>>, vector<8x128xf32>
    %cst = arith.constant 2.500000e-01 : f32
    %40 = vector.broadcast %cst : f32 to vector<8x128xf32>
    %41 = arith.mulf %38, %40 : vector<8x128xf32>
    %42 = arith.subf %37, %41 : vector<8x128xf32>
    %43 = arith.addf %39, %42 : vector<8x128xf32>
    %c0_6 = arith.constant 0 : index
    %c0_7 = arith.constant 0 : index
    %44 = vector.load %arg6[%c0_6, %c0_7] : memref<8x128xf32, #tpu.memory_space<vmem>>, vector<8x128xf32>
    tpu.vector_store %arg6[%c0_6, %c0_7], %43 {strides = array<i32>} : memref<8x128xf32, #tpu.memory_space<vmem>>, vector<8x128xf32>,
    %c0_i32_8 = arith.constant 0 : i32
    %45 = arith.cmpi eq, %arg2, %c0_i32_8 : i32
    %46 = arith.extui %45 : i1 to i32
    %c0_i32_9 = arith.constant 0 : i32
    %47 = arith.cmpi ne, %46, %c0_i32_9 : i32
    scf.if %47 {
      %c0_10 = arith.constant 0 : index
      %c0_11 = arith.constant 0 : index
      %48 = vector.load %arg6[%c0_10, %c0_11] : memref<8x128xf32, #tpu.memory_space<vmem>>, vector<8x128xf32>
      %cst_12 = arith.constant dense<0.000000e+00> : vector<8xf32>
      %49 = vector.multi_reduction <add>, %48, %cst_12 [1] : vector<8x128xf32> to vector<8xf32>
      %50 = vector.shape_cast %49 : vector<8xf32> to vector<8x1xf32>
      %51 = vector.shape_cast %50 : vector<8x1xf32> to vector<1x8x1xf32>
      %c0_13 = arith.constant 0 : index
      %c0_14 = arith.constant 0 : index
      %c0_15 = arith.constant 0 : index
      %52 = vector.load %arg5[%c0_13, %c0_14, %c0_15] : memref<1x8x1xf32, #tpu.memory_space<vmem>>, vector<1x8x1xf32>
      tpu.vector_store %arg5[%c0_13, %c0_14, %c0_15], %51 {strides = array<i32>} : memref<1x8x1xf32, #tpu.memory_space<vmem>>, vector<1x8x1xf32>,
    } else {
    }
    return
  }
  func.func @transform_0(%arg0: i32, %arg1: i32, %arg2: i32) -> (i32, i32) {
    %c1_i32 = arith.constant 1 : i32
    %0 = arith.muli %arg0, %c1_i32 : i32
    %1 = arith.addi %0, %arg2 : i32
    %c0_i32 = arith.constant 0 : i32
    %c0_i32_0 = arith.constant 0 : i32
    return %c0_i32, %1 : i32, i32
  }
  func.func @transform_1(%arg0: i32, %arg1: i32, %arg2: i32) -> (i32, i32) {
    %c0_i32 = arith.constant 0 : i32
    %c0_i32_0 = arith.constant 0 : i32
    return %arg1, %c0_i32 : i32, i32
  }
  func.func @transform_2(%arg0: i32, %arg1: i32, %arg2: i32) -> (i32, i32, i32) {
    %c0_i32 = arith.constant 0 : i32
    %c0_i32_0 = arith.constant 0 : i32
    return %arg0, %arg1, %c0_i32 : i32, i32, i32
  }
}

</mosaic_0001>

<bundles_post_ra>
// kernel: tpu_custom_call.1
= control target key start
LH: loop header
LB: loop body
LE: loop exit
PB: predicated region body
PF: predicated region fallthrough
CT: control target
= control target key end

     0   :  { %v126_v0 = vmov 0   ;;  %v127_v2 = vmov 2   ;;  %v128_v3 = vmov 1   ;;  %v129_v4 = vmov 3   ;;  %s154_s1 = inlined_call_operand.vmem [shape: f32[8,4], index: 1, kind: input, shape index: {}]   ;;  %s155_s0 = inlined_call_operand.vmem [shape: f32[4,128], index: 0, kind: input, shape index: {}]   ;;  %s156_s2 = inlined_call_operand.vmem [shape: f32[1,8,1], index: 2, kind: output, shape index: {}]  }
   0x1   :  { %113 = vset.pattern.permute.xlu0 %v126_v0  ;;  %v33_v1 = vld [vmem:[%s154_s1] sm:$0xff]  ;;  %115 = vset.pattern.permute.xlu1 %v127_v2  ;;  %v52_v5 = vlaneseq  ;;  %vm97_vm0 = vcmask 7168  }
   0x2   :  { %36 = vperm.xlu0 %113, %v33_v1   ;;  %44 = vperm.xlu1 %115, %v33_v1   ;;  %v51_v8 = vld [vmem:[%s155_s0] sm:$0xf] }
   0x3   :  { %v53_v6 = vshrl.u32 %v52_v5, 7 }
   0x5   :  { %v54_v7 = vsub.s32 0, %v53_v6  ;;  %v70_v9 = vsub.s32 2, %v53_v6  ;;  %v61_v11 = vsub.s32 1, %v53_v6  ;;  %v79_v12 = vsub.s32 3, %v53_v6 }
   0x6   :  { %114 = vset.pattern.permute.xlu0 %v128_v3  ;;  %116 = vset.pattern.permute.xlu1 %v129_v4 }
   0x7   :  { %40 = vperm.xlu0 %114, %v33_v1   ;;  %48 = vperm.xlu1 %116, %v33_v1   ;;  %v55_v10 = vrot.slane %v51_v8, %v54_v7  ;;  %v71_v13 = vrot.slane %v51_v8, %v70_v9  ;;  %v62_v17 = vrot.slane %v51_v8, %v61_v11 }
   0x8   :  { %v80_v18 = vrot.slane %v51_v8, %v79_v12 }
   0xb   :  { %117 = vset.pattern.permute.xlu0 %v129_v4 }
  0x81   :  { %v37_v14 = vpop.permute.xlu0 %36  ;;  %v45_v15 = vpop.permute.xlu1 %44 }
  0x82   :  { %v56_v16 = vmul.f32 %v55_v10, %v37_v14  ;;  %v72_v19 = vmul.f32 %v71_v13, %v45_v15 }
  0x84   :  { %v57_v20 = vmul.f32 1.442695, %v56_v16  ;;  %v73_v25 = vmul.f32 1.442695, %v72_v19 }
  0x86   :  { %v41_v21 = vpop.permute.xlu0 %40  ;;  %v49_v22 = vpop.permute.xlu1 %48  ;;  %118 = vpow2.f32 %v57_v20 }
  0x87   :  { %v63_v23 = vmul.f32 %v62_v17, %v41_v21  ;;  %v81_v24 = vmul.f32 %v80_v18, %v49_v22 }
  0x89   :  { %v64_v26 = vmul.f32 1.442695, %v63_v23  ;;  %v82_v27 = vmul.f32 1.442695, %v81_v24 }
  0x8b   :  { %120 = vpow2.f32 %v64_v26 }
  0x8c   :  { %122 = vpow2.f32 %v73_v25 }
  0x8d   :  { %124 = vpow2.f32 %v82_v27 }
  0x90   :  { %v119_v28 = vpop.eup %118 }
  0x95   :  { %v121_v29 = vpop.eup %120 }
  0x96   :  { %v123_v30 = vpop.eup %122  ;;  %v66_v31 = vmax.f32 %v119_v28, %v121_v29  ;;  %v67_v32 = vadd.f32 %v121_v29, %v119_v28 }
  0x97   :  { %v125_v33 = vpop.eup %124 }
  0x98   :  { %v75_v34 = vmax.f32 %v66_v31, %v123_v30  ;;  %v76_v35 = vadd.f32 %v123_v30, %v67_v32 }
  0x9a   :  { %v85_v36 = vadd.f32 %v125_v33, %v76_v35  ;;  %v84_v37 = vmax.f32 %v75_v34, %v125_v33 }
  0x9c   :  { %v87_v38 = vmul.f32 0.25, %v85_v36 }
  0x9e   :  { %v88_v39 = vsub.f32 %v84_v37, %v87_v38 }
  0xa0   :  { %95 = vadd.xlane.f32.xlu1 %v88_v39 }
 0x12d   :  { %v96_v40 = vpop.xlane.xlu1 %95 }
 0x12e   :  { %98 = vst.msk [vmem:[%s156_s2] sm:$0xff] %vm97_vm0, %v96_v40 }

</bundles_post_ra>
